<compile_context>
chip_gen: v6e
topology: v6e:2x2x1
jax: 0.10.0
libtpu: 0.0.40
codegen_flags: <defaults>
</compile_context>

<pallas_src>
import functools
import math

import numpy as np
import jax
import jax.numpy as jnp
from jax import lax
from jax.experimental import pallas as pl
from jax.experimental.pallas import tpu as pltpu


_MASK = -1e30  # finite "minus infinity": avoids NaN from (-inf) - (-inf) in the online LSE


def _round_up(x, m):
    return ((x + m - 1) // m) * m


def _instance_loss_kernel(z_rows_ref, z_part_ref, z_cols_ref, loss_ref, m_sc, s_sc, *,
                          temperature, n_valid, n_pad, matmul_in_bf16):
    i = pl.program_id(0)      # row-block index    ("parallel")
    j = pl.program_id(1)      # column-block index ("arbitrary": online LSE reduction axis)
    tm = z_rows_ref.shape[0]
    tn = z_cols_ref.shape[1]

    @pl.when(j == 0)
    def _init():
        m_sc[...] = jnp.full_like(m_sc, _MASK)
        s_sc[...] = jnp.zeros_like(s_sc)

    # Row block with 1/temperature folded into the small operand (rides the MXU for free).
    inv_t = jnp.float32(1.0 / temperature)
    z_rows = z_rows_ref[...].astype(jnp.float32) * inv_t                 # (TM, d) f32
    lhs = z_rows.astype(jnp.bfloat16) if matmul_in_bf16 else z_rows
    rhs = z_cols_ref[...]                                                # (d, TN), pre-transposed
                                                                         # (and pre-cast) in wrapper
    # (TM, d) @ (d, TN) -> (TM, TN) sim tile; f32 MXU accumulation; neighbor axis on lanes.
    sim = lax.dot_general(lhs, rhs, (((1,), (0,)), ((), ())),
                          preferred_element_type=jnp.float32)

    # Mask the diagonal (j == k); mask padded columns only if padding exists (trace-time check).
    grow = i * tm + lax.broadcasted_iota(jnp.int32, (tm, 1), 0)          # (TM, 1) global row ids
    gcol = j * tn + lax.broadcasted_iota(jnp.int32, (tm, tn), 1)         # (TM, TN) global col ids
    mask = gcol == grow
    if n_pad != n_valid:
        mask = mask | (gcol >= n_valid)
    masked = jnp.where(mask, jnp.float32(_MASK), sim)

    # Online (flash-style) numerically stable logsumexp across column tiles.
    m_prev = m_sc[...]
    m_new = jnp.maximum(m_prev, jnp.max(masked, axis=1, keepdims=True))
    s_sc[...] = s_sc[...] * jnp.exp(m_prev - m_new) + jnp.sum(
        jnp.exp(masked - m_new), axis=1, keepdims=True)
    m_sc[...] = m_new

    @pl.when(j == pl.num_programs(1) - 1)
    def _finalize():
        # Positive logit: sim[k, (k+B) mod N] == <z[k], z_partner[k]> / temperature, where
        # z_partner is the batch-rolled copy of z. O(TM*d) row-wise dot, done once per row block.
        pos = jnp.sum(z_rows * z_part_ref[...].astype(jnp.float32), axis=1, keepdims=True)
        loss_ref[...] = m_sc[...] + jnp.log(s_sc[...]) - pos             # per-row CE (label == 0)


def instance_loss(z_i, z_j, temperature=0.5, block_rows=None, block_cols=None,
                  matmul_in_bf16=None):
    """Scalar f32 loss matching InstanceLoss(batch_size, temperature).forward(z_i, z_j).

    matmul_in_bf16=None -> auto: bf16 MXU operands (f32 accumulation) once N = 2*batch >= 1024.
    """
    batch_size, d = z_i.shape
    n = 2 * batch_size
    z = jnp.concatenate([z_i, z_j], axis=0).astype(jnp.float32)            # (N, d)
    z_partner = jnp.concatenate([z_j, z_i], axis=0).astype(jnp.float32)    # row k == z[(k+B) % N]

    if matmul_in_bf16 is None:
        matmul_in_bf16 = n >= 1024
    matmul_in_bf16 = bool(matmul_in_bf16)

    try:
        vmem_cap = int(pltpu.get_tpu_info().vmem_capacity_bytes)
    except Exception:
        vmem_cap = 128 * 2**20

    # Row tile: larger cap on 128-MiB parts (v5e/v6e), smaller on v7x (64 MiB per TensorCore).
    tm_cap = 512 if vmem_cap >= 100 * 2**20 else 256
    tm = tm_cap if block_rows is None else int(block_rows)
    tm = max(8, (tm // 8) * 8)
    tm = min(tm, _round_up(n, 8))

    # Column tile: single sweep for small N; else 1024-wide tiles (multiple of 128) so VMEM stays
    # O(TM*TN + d*TN) instead of O(TM*N + d*N).
    if block_cols is not None:
        tn = max(128, (int(block_cols) // 128) * 128)
        n_pad = _round_up(n, math.lcm(tm, tn))
    else:
        n_pad = _round_up(n, tm)
        if n_pad <= 2048:
            tn = n_pad
        else:
            tn = 1024
            n_pad = _round_up(n, math.lcm(tm, tn))

    if n_pad != n:
        pad = ((0, n_pad - n), (0, 0))
        z = jnp.pad(z, pad)
        z_partner = jnp.pad(z_partner, pad)

    # Pre-transposed RHS (d, N_pad); bf16 halves residency + HBM DMA and unlocks bf16 MXU rate.
    z_t = z.T.astype(jnp.bfloat16) if matmul_in_bf16 else z.T

    grid = (n_pad // tm, n_pad // tn)
    n_row_blocks = grid[0]

    kernel = functools.partial(
        _instance_loss_kernel,
        temperature=float(temperature),
        n_valid=int(n),
        n_pad=int(n_pad),
        matmul_in_bf16=matmul_in_bf16,
    )

    rhs_bytes = 2 if matmul_in_bf16 else 4
    vmem_est = (
        2 * tm * d * 4              # row block (double-buffered)
        + 2 * tm * d * 4            # partner block
        + 2 * d * tn * rhs_bytes    # z^T column block
        + 2 * tm * 128 * 4          # output block (lane-padded)
        + 2 * tm * 128 * 4          # m/s scratch (lane-padded)
        + 8 * tm * tn * 4           # sim / masked / exp / iota temporaries
    )
    vmem_limit = int(min(int(0.75 * vmem_cap), max(32 * 2**20, 2 * vmem_est)))

    per_row = pl.pallas_call(
        kernel,
        out_shape=jax.ShapeDtypeStruct((n_pad, 1), jnp.float32),
        grid_spec=pltpu.PrefetchScalarGridSpec(
            num_scalar_prefetch=0,
            grid=grid,
            in_specs=[
                pl.BlockSpec((tm, d), lambda i, j: (i, 0)),    # z row block
                pl.BlockSpec((tm, d), lambda i, j: (i, 0)),    # partner row block
                pl.BlockSpec((d, tn), lambda i, j: (0, j)),    # z^T column block (streamed)
            ],
            out_specs=pl.BlockSpec((tm, 1), lambda i, j: (i, 0)),
            scratch_shapes=[pltpu.VMEM((tm, 1), jnp.float32),   # running max
                            pltpu.VMEM((tm, 1), jnp.float32)],  # running sum of exp
        ),
        compiler_params=pltpu.CompilerParams(
            dimension_semantics=("parallel", "arbitrary"),
            vmem_limit_bytes=vmem_limit,
        ),
        cost_estimate=pl.CostEstimate(
            flops=2 * n_pad * n_pad * d + 2 * n_pad * d,
            transcendentals=n_pad * n_pad + n_pad,
            bytes_accessed=(n_row_blocks * n_pad * d * rhs_bytes
                            + 2 * n_pad * d * 4 + n_pad * 4),
        ),
    )(z, z_partner, z_t)

    # reduction='sum' over the N real rows, then / N (padded rows discarded).
    return jnp.sum(per_row[:n, 0]) / n


def _reference_loss_np(z_i, z_j, temperature):
    """Literal numpy mirror of InstanceLoss.forward (f64), for validation."""
    z_i = np.asarray(z_i, np.float64)
    z_j = np.asarray(z_j, np.float64)
    b = z_i.shape[0]
    n = 2 * b
    z = np.concatenate([z_i, z_j], axis=0)
    sim = (z @ z.T) / temperature
    sim_i_j = np.diag(sim, b)
    sim_j_i = np.diag(sim, -b)
    pos = np.concatenate([sim_i_j, sim_j_i]).reshape(n, 1)
    mask = np.ones((n, n), dtype=bool)
    np.fill_diagonal(mask, False)
    for i in range(b):
        mask[i, b + i] = False
        mask[b + i, i] = False
    neg = sim[mask].reshape(n, -1)
    logits = np.concatenate([pos, neg], axis=1)
    # CrossEntropyLoss(reduction='sum') with all-zero labels.
    m = logits.max(axis=1, keepdims=True)
    lse = m[:, 0] + np.log(np.exp(logits - m).sum(axis=1))
    loss = np.sum(lse - logits[:, 0]) / n
    return np.float32(loss)


if __name__ == "__main__":
    key = jax.random.PRNGKey(0)
    keys = jax.random.split(key, 5)

    def check(seed_key, batch_size, dim_fea, tol, **kw):
        k1, k2 = jax.random.split(seed_key)
        z_i = jax.random.normal(k1, (batch_size, dim_fea), dtype=jnp.float32)
        z_j = jax.random.normal(k2, (batch_size, dim_fea), dtype=jnp.float32)
        out = jax.block_until_ready(instance_loss(z_i, z_j, 0.5, **kw))
        ref = _reference_loss_np(z_i, z_j, 0.5)
        err = abs(float(out) - float(ref)) / max(1.0, abs(float(ref)))
        assert err < tol, (kw, float(out), float(ref), err)
        return float(out)

    # (A) multi row-block grid at toy size (2 row blocks, single column sweep).
    check(keys[0], 8, 32, 1e-4, block_rows=8)
    # (B) degenerate grid: one block covers everything.
    check(keys[1], 8, 32, 1e-4, block_rows=16)
    # (C) padded rows/columns path (N = 12 padded to 16).
    check(keys[2], 6, 32, 1e-4, block_rows=8)
    # (D) real 2-D grid: online logsumexp across multiple column tiles.
    check(keys[3], 128, 32, 1e-4, block_rows=64, block_cols=128)
    # (E) bf16 MXU-operand path (f32 accumulation), loose tolerance.
    check(keys[4], 128, 32, 5e-2, block_rows=64, block_cols=128, matmul_in_bf16=True)

    print("KERNEL_OK")
</pallas_src>

<mosaic_0001>
module attributes {stable_mosaic.version = 11 : i64} {
  func.func @_instance_loss_kernel(%arg0: i32, %arg1: i32, %arg2: memref<8x32xf32, #tpu.memory_space<vmem>>, %arg3: memref<8x32xf32, #tpu.memory_space<vmem>>, %arg4: memref<32x16xf32, #tpu.memory_space<vmem>>, %arg5: memref<8x1xf32, #tpu.memory_space<vmem>>, %arg6: memref<8x1xf32, #tpu.memory_space<vmem>>, %arg7: memref<8x1xf32, #tpu.memory_space<vmem>>) attributes {dimension_semantics = [#tpu.dimension_semantics<parallel>, #tpu.dimension_semantics<arbitrary>], iteration_bounds = array<i64: 2, 1>, scalar_prefetch = 0 : i64, scratch_operands = 2 : i64, tpu.core_type = #tpu.core_type<tc>, window_params = [{transform_indices = @transform_0, window_bounds = array<i64: 8, 32>}, {transform_indices = @transform_1, window_bounds = array<i64: 8, 32>}, {transform_indices = @transform_2, window_bounds = array<i64: 32, 16>}, {transform_indices = @transform_3, window_bounds = array<i64: 8, 1>}]} {
    %c0_i32 = arith.constant 0 : i32
    %0 = arith.cmpi eq, %arg1, %c0_i32 : i32
    %1 = arith.extui %0 : i1 to i32
    %c0_i32_0 = arith.constant 0 : i32
    %2 = arith.cmpi ne, %1, %c0_i32_0 : i32
    scf.if %2 {
      %cst_18 = arith.constant -1.000000e+30 : f32
      %39 = vector.broadcast %cst_18 : f32 to vector<8x1xf32>
      %c0_19 = arith.constant 0 : index
      %c0_20 = arith.constant 0 : index
      %40 = vector.load %arg6[%c0_19, %c0_20] : memref<8x1xf32, #tpu.memory_space<vmem>>, vector<8x1xf32>
      tpu.vector_store %arg6[%c0_19, %c0_20], %39 {strides = array<i32>} : memref<8x1xf32, #tpu.memory_space<vmem>>, vector<8x1xf32>,
      %cst_21 = arith.constant 0.000000e+00 : f32
      %41 = vector.broadcast %cst_21 : f32 to vector<8x1xf32>
      %c0_22 = arith.constant 0 : index
      %c0_23 = arith.constant 0 : index
      %42 = vector.load %arg7[%c0_22, %c0_23] : memref<8x1xf32, #tpu.memory_space<vmem>>, vector<8x1xf32>
      tpu.vector_store %arg7[%c0_22, %c0_23], %41 {strides = array<i32>} : memref<8x1xf32, #tpu.memory_space<vmem>>, vector<8x1xf32>,
    } else {
    }
    %c0 = arith.constant 0 : index
    %c0_1 = arith.constant 0 : index
    %3 = vector.load %arg2[%c0, %c0_1] : memref<8x32xf32, #tpu.memory_space<vmem>>, vector<8x32xf32>
    %cst = arith.constant 2.000000e+00 : f32
    %4 = vector.broadcast %cst : f32 to vector<8x32xf32>
    %5 = arith.mulf %3, %4 : vector<8x32xf32>
    %c0_2 = arith.constant 0 : index
    %c0_3 = arith.constant 0 : index
    %6 = vector.load %arg4[%c0_2, %c0_3] : memref<32x16xf32, #tpu.memory_space<vmem>>, vector<32x16xf32>
    %cst_4 = arith.constant dense<0.000000e+00> : vector<8x16xf32>
    %7 = tpu.matmul %5, %6, %cst_4 {dimension_numbers = #tpu.dot_dimension_numbers<[1], [0], [0], [1], [0, 0, 1, 1], [], []>} : vector<8x32xf32>, vector<32x16xf32>, vector<8x16xf32> -> vector<8x16xf32>
    %c8_i32 = arith.constant 8 : i32
    %8 = arith.muli %arg0, %c8_i32 : i32
    %9 = tpu.iota {dimensions = array<i32: 0>} : vector<8x1xi32>
    %10 = vector.broadcast %8 : i32 to vector<8x1xi32>
    %11 = arith.addi %10, %9 : vector<8x1xi32>
    %c16_i32 = arith.constant 16 : i32
    %12 = arith.muli %arg1, %c16_i32 : i32
    %13 = tpu.iota {dimensions = array<i32: 1>} : vector<8x16xi32>
    %14 = vector.broadcast %12 : i32 to vector<8x16xi32>
    %15 = arith.addi %14, %13 : vector<8x16xi32>
    %16 = vector.broadcast %11 : vector<8x1xi32> to vector<8x16xi32>
    %17 = arith.cmpi eq, %15, %16 : vector<8x16xi32>
    %cst_5 = arith.constant -1.000000e+30 : f32
    %18 = vector.broadcast %cst_5 : f32 to vector<8x16xf32>
    %19 = arith.select %17, %18, %7 : vector<8x16xi1>, vector<8x16xf32>
    %c0_6 = arith.constant 0 : index
    %c0_7 = arith.constant 0 : index
    %20 = vector.load %arg6[%c0_6, %c0_7] : memref<8x1xf32, #tpu.memory_space<vmem>>, vector<8x1xf32>
    %cst_8 = arith.constant dense<0xFF800000> : vector<8xf32>
    %21 = vector.multi_reduction <maximumf>, %19, %cst_8 [1] : vector<8x16xf32> to vector<8xf32>
    %22 = vector.shape_cast %21 : vector<8xf32> to vector<8x1xf32>
    %23 = arith.maximumf %20, %22 : vector<8x1xf32>
    %c0_9 = arith.constant 0 : index
    %c0_10 = arith.constant 0 : index
    %24 = vector.load %arg7[%c0_9, %c0_10] : memref<8x1xf32, #tpu.memory_space<vmem>>, vector<8x1xf32>
    %25 = arith.subf %20, %23 : vector<8x1xf32>
    %26 = math.exp %25 : vector<8x1xf32>
    %27 = arith.mulf %24, %26 : vector<8x1xf32>
    %28 = vector.broadcast %23 : vector<8x1xf32> to vector<8x16xf32>
    %29 = arith.subf %19, %28 : vector<8x16xf32>
    %30 = math.exp %29 : vector<8x16xf32>
    %cst_11 = arith.constant dense<0.000000e+00> : vector<8xf32>
    %31 = vector.multi_reduction <add>, %30, %cst_11 [1] : vector<8x16xf32> to vector<8xf32>
    %32 = vector.shape_cast %31 : vector<8xf32> to vector<8x1xf32>
    %33 = arith.addf %27, %32 : vector<8x1xf32>
    %c0_12 = arith.constant 0 : index
    %c0_13 = arith.constant 0 : index
    %34 = vector.load %arg7[%c0_12, %c0_13] : memref<8x1xf32, #tpu.memory_space<vmem>>, vector<8x1xf32>
    tpu.vector_store %arg7[%c0_12, %c0_13], %33 {strides = array<i32>} : memref<8x1xf32, #tpu.memory_space<vmem>>, vector<8x1xf32>,
    %c0_14 = arith.constant 0 : index
    %c0_15 = arith.constant 0 : index
    %35 = vector.load %arg6[%c0_14, %c0_15] : memref<8x1xf32, #tpu.memory_space<vmem>>, vector<8x1xf32>
    tpu.vector_store %arg6[%c0_14, %c0_15], %23 {strides = array<i32>} : memref<8x1xf32, #tpu.memory_space<vmem>>, vector<8x1xf32>,
    %c0_i32_16 = arith.constant 0 : i32
    %36 = arith.cmpi eq, %arg1, %c0_i32_16 : i32
    %37 = arith.extui %36 : i1 to i32
    %c0_i32_17 = arith.constant 0 : i32
    %38 = arith.cmpi ne, %37, %c0_i32_17 : i32
    scf.if %38 {
      %c0_18 = arith.constant 0 : index
      %c0_19 = arith.constant 0 : index
      %39 = vector.load %arg3[%c0_18, %c0_19] : memref<8x32xf32, #tpu.memory_space<vmem>>, vector<8x32xf32>
      %40 = arith.mulf %5, %39 : vector<8x32xf32>
      %cst_20 = arith.constant dense<0.000000e+00> : vector<8xf32>
      %41 = vector.multi_reduction <add>, %40, %cst_20 [1] : vector<8x32xf32> to vector<8xf32>
      %42 = vector.shape_cast %41 : vector<8xf32> to vector<8x1xf32>
      %c0_21 = arith.constant 0 : index
      %c0_22 = arith.constant 0 : index
      %43 = vector.load %arg6[%c0_21, %c0_22] : memref<8x1xf32, #tpu.memory_space<vmem>>, vector<8x1xf32>
      %c0_23 = arith.constant 0 : index
      %c0_24 = arith.constant 0 : index
      %44 = vector.load %arg7[%c0_23, %c0_24] : memref<8x1xf32, #tpu.memory_space<vmem>>, vector<8x1xf32>
      %45 = math.log %44 : vector<8x1xf32>
      %46 = arith.addf %43, %45 : vector<8x1xf32>
      %47 = arith.subf %46, %42 : vector<8x1xf32>
      %c0_25 = arith.constant 0 : index
      %c0_26 = arith.constant 0 : index
      %48 = vector.load %arg5[%c0_25, %c0_26] : memref<8x1xf32, #tpu.memory_space<vmem>>, vector<8x1xf32>
      tpu.vector_store %arg5[%c0_25, %c0_26], %47 {strides = array<i32>} : memref<8x1xf32, #tpu.memory_space<vmem>>, vector<8x1xf32>,
    } else {
    }
    return
  }
  func.func @transform_0(%arg0: i32, %arg1: i32) -> (i32, i32) {
    %c0_i32 = arith.constant 0 : i32
    %c0_i32_0 = arith.constant 0 : i32
    return %arg0, %c0_i32 : i32, i32
  }
  func.func @transform_1(%arg0: i32, %arg1: i32) -> (i32, i32) {
    %c0_i32 = arith.constant 0 : i32
    %c0_i32_0 = arith.constant 0 : i32
    return %arg0, %c0_i32 : i32, i32
  }
  func.func @transform_2(%arg0: i32, %arg1: i32) -> (i32, i32) {
    %c0_i32 = arith.constant 0 : i32
    %c0_i32_0 = arith.constant 0 : i32
    return %c0_i32, %arg1 : i32, i32
  }
  func.func @transform_3(%arg0: i32, %arg1: i32) -> (i32, i32) {
    %c0_i32 = arith.constant 0 : i32
    %c0_i32_0 = arith.constant 0 : i32
    return %arg0, %c0_i32 : i32, i32
  }
}

</mosaic_0001>

<bundles_post_ra>
// kernel: tpu_custom_call.1
= control target key start
LH: loop header
LB: loop body
LE: loop exit
PB: predicated region body
PF: predicated region fallthrough
CT: control target
= control target key end

     0   :  { %s553_s12 = smov 0   ;;  %s555_s13 = smov 0   ;;  %s620_s0 = inlined_call_operand.vmem [shape: f32[16,32], index: 0, kind: input, shape index: {}]   ;;  %s621_s1 = inlined_call_operand.vmem [shape: f32[16,32], index: 1, kind: input, shape index: {}]   ;;  %s622_s2 = inlined_call_operand.vmem [shape: f32[32,16], index: 2, kind: input, shape index: {}]   ;;  %s623_s3 = inlined_call_operand.vmem [shape: f32[16,1], index: 3, kind: output, shape index: {}]  }
   0x1   :  { %s557_s14 = smov 0  }
   0x2 LB: > { %s25_s15 = sadd.s32 1, %s523_s13  ;;  %p446_p0 = scmp.ge.s32.totalorder %s527_s14, 1  ;;  %s527_s14 = sphi %s557_s14, %s13_s14   ;;  %s523_s13 = sphi %s555_s13, %s625_s13   ;;  %s519_s12 = sphi %s553_s12, %s624_s12  }
   0x3   : > { %p27_p1 = scmp.ge.s32.totalorder %s25_s15, 2  ;;  %p166_p2 = scmp.lt.s32.totalorder %s527_s14, 3 }
   0x5   : > { %s627_s15 = smov (%p27_p1, %s25_s15), 0  ;;  %p167_p3 = pnand %p446_p0, %p166_p2 }
   0x6   : > { %p196_p4 = scmp.lt.s32.totalorder (!%p167_p3), %s519_s12, 1  ;;  %s451_s29 = sshll.u32 (!%p167_p3), %s519_s12, 3 }
   0x7   : > { %170 = sbr.rel (%p167_p3) target bundleno = 668 (0x29c), region = 32 }
   0xc   : > { %v224_v0 = vld [vmem:[%s622_s2 + $0x18] sm:$0xff]  ;;  %v529_v1 = vmov 0.0   ;;  %v223_v2 = vld [vmem:[%s622_s2 + $0x10] sm:$0xff]  ;;  %vm530_vm0 = vmmov 0   ;;  %s197_s20 = scalar_select %p196_p4, %s519_s12, 1  ;;  %v222_v3 = vld [vmem:[%s622_s2 + $0x8] sm:$0xff]  ;;  %v300_v8 = vlaneseq  ;;  %v302_v10 = vstv %s451_s29 }
   0xd   : > { %459 = vmatprep.subr.mxu0 %v529_v1  ;;  %467 = vmatprep.mubr.msk.f32.mxu0 %vm530_vm0, %v529_v1  ;;  %v221_v4 = vld [vmem:[%s622_s2] sm:$0xff]  ;;  %vm225_vm1 = vcmask 261120   ;;  %vm216_vm2 = vcmask 7168   ;;  %v531_v7 = vmov -1e+30   ;;  %vm312_vm4 = vcmask 130048  }
   0xe   : > { %460 = vmatpush3.msra.mxu0 %v224_v0  ;;  %s584_s23 = sshll.u32 %s197_s20, 3  ;;  %217 = vst.msk [vmem:[#allocation2] sm:$0xff] %vm216_vm2, %v531_v7  ;;  %218 = vst.msk [vmem:[#allocation3] sm:$0xff] %vm216_vm2, %v529_v1  ;;  %v301_v9 = vshrl.u32 %v300_v8, 7  ;;  %v306_v12 = vand.u32 127, %v300_v8  ;;  %v532_v17 = vmov 0  }
   0xf   : > { %461 = vmatprep.subr.mxu0 %v529_v1  ;;  %s199_s28 = scalar_lea.vmem %s620_s0, %s584_s23  ;;  %498 = vset.pattern.permute.xlu0 %v532_v17  ;;  %s203_s5 = scalar_lea.vmem %s621_s1, %s584_s23 }
  0x10   : > { %462 = vmatpush3.msra.mxu0 %v223_v2  ;;  %v219_v5 = vld [vmem:[%s199_s28] sm:$0xff]  ;;  %v303_v11 = vadd.s32 %v302_v10, %v301_v9  ;;  %s211_s8 = scalar_lea.vmem %s623_s3, %s584_s23 }
  0x11   : > { %463 = vmatprep.subr.mxu0 %v529_v1  ;;  %v220_v6 = vmul.f32 2.0, %v219_v5  ;;  %v340_v25 = vld [vmem:[%s203_s5] sm:$0xff] }
  0x12   : > { %464 = vmatpush3.msra.mxu0 %v222_v3  ;;  %vm309_vm3 = vcmp.eq.s32.totalorder %v306_v12, %v303_v11 }
  0x13   : > { %465 = vmatprep.subr.mxu0 %v529_v1  ;;  %v341_v26 = vmul.f32 %v340_v25, %v220_v6 }
  0x14   : > { %466 = vmatpush3.msra.mxu0 %v221_v4 }
  0x15   : > { %468 = vmatmul.mubr.msk.f32.vlgmr.msra.gmra.mxu0 %vm225_vm1, %v220_v6  ;;  %v311_v18 = vld [vmem:[#allocation2] sm:$0xff]  ;;  %v342_v29 = vsel %vm225_vm1, %v341_v26, 0.0  ;;  %v317_v32 = vld [vmem:[#allocation3] sm:$0xff] }
  0xd5   : > { %v295_v13 = vpop.f32.mrf.mxu0 }
  0xd6   : > { %v310_v14 = vsel %vm309_vm3, -1e+30, %v295_v13 }
  0xd7   : > { %v469_v15 = vpop.f32.mrf.mxu0  ;;  %v313_v16 = vsel %vm312_vm4, %v310_v14, -inf }
  0xd8   : > { %314 = vmax.xlane.f32.xlu0 %v313_v16 }
 0x161   : > { %v315_v19 = vpop.xlane.xlu0 %314 }
 0x162   : > { %v316_v20 = vmax.f32 %v311_v18, %v315_v19 }
 0x164   : > { %v318_v21 = vsub.f32 %v311_v18, %v316_v20  ;;  %336 = vst.msk [vmem:[#allocation2] sm:$0xff] %vm216_vm2, %v316_v20  ;;  %324 = vperm.xlu0 %498, %v316_v20  }
 0x166   : > { %v319_v30 = vmul.f32 1.442695, %v318_v21 }
 0x16b   : > { %v345_v40 = vld [vmem:[#allocation2] sm:$0xff] }
 0x1df   : > { %v325_v22 = vpop.permute.xlu0 %324 }
 0x1e0   : > { %v327_v23 = vsub.f32 %v310_v14, %v325_v22 }
 0x1e2   : > { %v328_v24 = vmul.f32 1.442695, %v327_v23 }
 0x1e4   : > { %499 = vpow2.f32 %v328_v24 }
 0x1e5   : > { %501 = vpow2.f32 %v319_v30 }
 0x1f1   : > { %v500_v27 = vpop.eup %499 }
 0x1f2   : > { %v330_v28 = vsel %vm312_vm4, %v500_v27, 0.0  ;;  %v502_v31 = vpop.eup %501 }
 0x1f3   : > { %331 = vadd.xlane.f32.xlu1 %v330_v28  ;;  %v321_v33 = vmul.f32 %v502_v31, %v317_v32 }
 0x1f7   : > { %343 = vadd.xlane.f32.xlu1 %v342_v29 }
 0x27c   : > { %v332_v34 = vpop.xlane.xlu1 %331 }
 0x27d   : > { %v333_v35 = vadd.f32 %v332_v34, %v321_v33 }
 0x27f   : > { %335 = vst.msk [vmem:[#allocation3] sm:$0xff] %vm216_vm2, %v333_v35 }
 0x280   : > { %v344_v39 = vpop.xlane.xlu1 %343 }
 0x286   : > { %v346_v36 = vld [vmem:[#allocation3] sm:$0xff] }
 0x287   : > { %503 = vlog2.f32 %v346_v36 }
 0x294   : > { %v504_v37 = vpop.eup %503 }
 0x295   : > { %v348_v38 = vmul.f32 0.6931472, %v504_v37 }
 0x297   : > { %v349_v41 = vadd.f32 %v348_v38, %v345_v40 }
 0x299   : > { %v350_v42 = vsub.f32 %v349_v41, %v344_v39 }
 0x29b   : > { %351 = vst.msk [vmem:[%s211_s8] sm:$0xff] %vm216_vm2, %v350_v42 }
 0x29c PF: > { %s13_s14 = sadd.s32 1, %s527_s14   ;;  %s624_s12 = smov %s523_s13 }
 0x29d   : > { %p10_p5 = scmp.ge.s32.totalorder %s13_s14, 4   ;;  %s625_s13 = smov %s627_s15 }
 0x29f   :  { %12 = sbr.rel (!%p10_p5) target bundleno = 2 (0x2), region = 76 }

</bundles_post_ra>
